<compile_context>
chip_gen: v6e
topology: v6e:2x2x1
jax: 0.10.0
libtpu: 0.0.40
codegen_flags: <defaults>
</compile_context>

<pallas_src>
import math

import jax
import jax.numpy as jnp
from jax.experimental import pallas as pl
from jax.experimental.pallas import tpu as pltpu


def _gaussian_policy_kernel(ids_smem, w1_hbm, b1_ref, wcat_ref, bcat_ref,
                            out_ref, rows_vmem, sem):
    tb = rows_vmem.shape[0]
    base = pl.program_id(0) * tb

    # ---- gather: DMA this tile's tb selected W1 rows from HBM into VMEM ----
    @pl.loop(0, tb)
    def _start(r):
        uid = ids_smem[base + r]                       # clamped in the wrapper
        pltpu.make_async_copy(w1_hbm.at[uid], rows_vmem.at[r], sem.at[r]).start()

    @pl.loop(0, tb)
    def _wait(r):
        # src index is irrelevant for wait (sem + transfer size only).
        pltpu.make_async_copy(w1_hbm.at[0], rows_vmem.at[r], sem.at[r]).wait()

    # ---- hidden = relu(W1[xb] + b1)   (== relu(one_hot(xb) @ W1 + b1)) -----
    h = jnp.maximum(rows_vmem[...] + b1_ref[...], 0.0)

    # ---- fused heads: [mu | sigma_sq | 0-pad] = h @ Wcat + bcat  (one store)
    out = jnp.dot(h, wcat_ref[...], preferred_element_type=jnp.float32)
    out_ref[...] = out + bcat_ref[...]


def _round_up(x, m):
    return (x + m - 1) // m * m


def gaussian_policy_forward(xb, w1, b1, wmu, bmu, wsig, bsig, *, block_b=64):
    """xb: (B,) int user ids. Returns (mu, sigma_sq), each (B, d_R) float32."""
    B = xb.shape[0]
    n_users, hidden = w1.shape
    d_R = wmu.shape[1]

    # ---- fuse the two heads and zero-pad to a full 128-lane output slab ----
    n_out = 2 * d_R
    n_pad = _round_up(n_out, 128)
    wcat = jnp.zeros((hidden, n_pad), jnp.float32)
    wcat = wcat.at[:, :d_R].set(wmu.astype(jnp.float32))
    wcat = wcat.at[:, d_R:n_out].set(wsig.astype(jnp.float32))
    bcat = jnp.zeros((1, n_pad), jnp.float32)
    bcat = bcat.at[0, :d_R].set(bmu.astype(jnp.float32))
    bcat = bcat.at[0, d_R:n_out].set(bsig.astype(jnp.float32))

    # ---- W1 with an extra all-zero row for out-of-range / padded ids -------
    # (jax.nn.one_hot gives a zero row for bad ids -> hidden = relu(b1); the
    #  clamped gather of this zero row reproduces that exactly.)
    w1_ext = jnp.concatenate(
        [w1.astype(jnp.float32), jnp.zeros((1, hidden), jnp.float32)], axis=0)

    # ---- batch tiling: tb rows per grid step (multiple of 8), pad B --------
    tb = min(_round_up(block_b, 8), _round_up(B, 8))
    b_pad = _round_up(B, tb)
    nb = b_pad // tb

    ids = xb.astype(jnp.int32)
    safe = jnp.where((ids >= 0) & (ids < n_users), ids, n_users)
    ids_pad = jnp.full((b_pad,), n_users, jnp.int32).at[:B].set(safe)

    b1_2d = b1.reshape(1, hidden).astype(jnp.float32)

    out = pl.pallas_call(
        _gaussian_policy_kernel,
        out_shape=jax.ShapeDtypeStruct((b_pad, n_pad), jnp.float32),
        grid_spec=pltpu.PrefetchScalarGridSpec(
            num_scalar_prefetch=1,                      # ids -> SMEM
            grid=(nb,),
            in_specs=[
                pl.BlockSpec(memory_space=pl.ANY),                     # W1 in HBM
                pl.BlockSpec((1, hidden), lambda i, ids_ref: (0, 0)),  # b1
                pl.BlockSpec((hidden, n_pad), lambda i, ids_ref: (0, 0)),  # [Wmu|Wsig]
                pl.BlockSpec((1, n_pad), lambda i, ids_ref: (0, 0)),   # [bmu|bsig]
            ],
            out_specs=pl.BlockSpec((tb, n_pad), lambda i, ids_ref: (i, 0)),
            scratch_shapes=[
                pltpu.VMEM((tb, hidden), jnp.float32),   # gathered W1 rows
                pltpu.SemaphoreType.DMA((tb,)),          # per-row DMA semaphores
            ],
        ),
        compiler_params=pltpu.CompilerParams(
            dimension_semantics=("parallel",)),          # shard B-tiles on v7x
    )(ids_pad, w1_ext, b1_2d, wcat, bcat)

    mu = out[:B, :d_R]
    sigma_sq = out[:B, d_R:n_out]
    return mu, sigma_sq


def _init_linear(key, fan_in, fan_out):
    """Deterministic init mimicking torch.nn.Linear default (uniform +/- 1/sqrt(fan_in))."""
    kw, kb = jax.random.split(key)
    bound = 1.0 / math.sqrt(fan_in)
    # stored as (in_features, out_features) for direct x @ W
    w = jax.random.uniform(kw, (fan_in, fan_out), jnp.float32, -bound, bound)
    b = jax.random.uniform(kb, (fan_out,), jnp.float32, -bound, bound)
    return w, b


def _reference_forward(xb, w1, b1, wmu, bmu, wsig, bsig, n_users):
    one_hot = jax.nn.one_hot(xb, n_users, dtype=jnp.float32)
    h = jax.nn.relu(one_hot @ w1 + b1)
    return h @ wmu + bmu, h @ wsig + bsig


if __name__ == "__main__":
    # Small shapes consistent with the module's __init__.
    n_users = 32
    d_R = 16
    hidden = 32
    batch = 8

    key = jax.random.PRNGKey(0)
    k_x, k1, k2, k3 = jax.random.split(key, 4)

    xb = jax.random.randint(k_x, (batch,), 0, n_users, dtype=jnp.int32)
    w1, b1 = _init_linear(k1, n_users, hidden)
    wmu, bmu = _init_linear(k2, hidden, d_R)
    wsig, bsig = _init_linear(k3, hidden, d_R)

    mu, sigma_sq = gaussian_policy_forward(xb, w1, b1, wmu, bmu, wsig, bsig)
    jax.block_until_ready((mu, sigma_sq))

    mu_ref, sig_ref = _reference_forward(xb, w1, b1, wmu, bmu, wsig, bsig, n_users)
    assert mu.shape == (batch, d_R) and sigma_sq.shape == (batch, d_R)
    assert jnp.allclose(mu, mu_ref, atol=1e-5), "mu mismatch"
    assert jnp.allclose(sigma_sq, sig_ref, atol=1e-5), "sigma_sq mismatch"

    print("KERNEL_OK")
</pallas_src>

<mosaic_0001>
module attributes {stable_mosaic.version = 11 : i64} {
  func.func @_gaussian_policy_kernel(%arg0: i32, %arg1: memref<8xi32, #tpu.memory_space<smem>>, %arg2: memref<33x32xf32, #tpu.memory_space<any>>, %arg3: memref<1x32xf32, #tpu.memory_space<vmem>>, %arg4: memref<32x128xf32, #tpu.memory_space<vmem>>, %arg5: memref<1x128xf32, #tpu.memory_space<vmem>>, %arg6: memref<8x128xf32, #tpu.memory_space<vmem>>, %arg7: memref<8x32xf32, #tpu.memory_space<vmem>>, %arg8: memref<8x!tpu.dma_semaphore, #tpu.memory_space<semaphore_mem>>) attributes {dimension_semantics = [#tpu.dimension_semantics<parallel>], iteration_bounds = array<i64: 1>, scalar_prefetch = 1 : i64, scratch_operands = 2 : i64, tpu.core_type = #tpu.core_type<tc>, window_params = [{}, {pipeline_mode = #tpu.pipeline_mode<synchronous>, transform_indices = @transform_1, window_bounds = array<i64: 1, 32>}, {pipeline_mode = #tpu.pipeline_mode<synchronous>, transform_indices = @transform_2, window_bounds = array<i64: 32, 128>}, {pipeline_mode = #tpu.pipeline_mode<synchronous>, transform_indices = @transform_3, window_bounds = array<i64: 1, 128>}, {transform_indices = @transform_4, window_bounds = array<i64: 8, 128>}]} {
    %c8_i32 = arith.constant 8 : i32
    %0 = arith.muli %arg0, %c8_i32 : i32
    %c0_i32 = arith.constant 0 : i32
    %c8_i32_0 = arith.constant 8 : i32
    %1 = arith.addi %c0_i32, %c8_i32_0 : i32
    %c1_i32 = arith.constant 1 : i32
    scf.for %arg9 = %c0_i32 to %1 step %c1_i32  : i32 {
      %c1_i32_16 = arith.constant 1 : i32
      %15 = arith.muli %arg9, %c1_i32_16 : i32
      %c0_i32_17 = arith.constant 0 : i32
      %16 = arith.addi %c0_i32_17, %15 : i32
      %17 = arith.addi %0, %16 : i32
      %18 = arith.index_cast %17 : i32 to index
      %19 = memref.load %arg1[%18] : memref<8xi32, #tpu.memory_space<smem>>
      %c0_i32_18 = arith.constant 0 : i32
      %20 = tpu.memref_slice %arg2[%19, %c0_i32_18] : memref<33x32xf32, #tpu.memory_space<any>> -> memref<1x32xf32, #tpu.memory_space<any>>
      %21 = tpu.memref_squeeze %20 : memref<1x32xf32, #tpu.memory_space<any>> -> memref<32xf32, #tpu.memory_space<any>>
      %c0_i32_19 = arith.constant 0 : i32
      %22 = tpu.memref_slice %arg7[%16, %c0_i32_19] : memref<8x32xf32, #tpu.memory_space<vmem>> -> memref<1x32xf32, #tpu.memory_space<vmem>>
      %23 = tpu.memref_squeeze %22 : memref<1x32xf32, #tpu.memory_space<vmem>> -> memref<32xf32, #tpu.memory_space<vmem>>
      %24 = tpu.memref_slice %arg8[%16] : memref<8x!tpu.dma_semaphore, #tpu.memory_space<semaphore_mem>> -> memref<1x!tpu.dma_semaphore, #tpu.memory_space<semaphore_mem>>
      %25 = tpu.memref_squeeze %24 : memref<1x!tpu.dma_semaphore, #tpu.memory_space<semaphore_mem>> -> memref<!tpu.dma_semaphore, #tpu.memory_space<semaphore_mem>>
      tpu.enqueue_dma source(%21 : memref<32xf32, #tpu.memory_space<any>>) target(%23 : memref<32xf32, #tpu.memory_space<vmem>>) target_semaphore(%25 : memref<!tpu.dma_semaphore, #tpu.memory_space<semaphore_mem>>)
    }
    %c8_i32_1 = arith.constant 8 : i32
    %c0_i32_2 = arith.constant 0 : i32
    %c8_i32_3 = arith.constant 8 : i32
    %2 = arith.addi %c0_i32_2, %c8_i32_3 : i32
    %c1_i32_4 = arith.constant 1 : i32
    scf.for %arg9 = %c0_i32_2 to %2 step %c1_i32_4  : i32 {
      %c1_i32_16 = arith.constant 1 : i32
      %15 = arith.muli %arg9, %c1_i32_16 : i32
      %c0_i32_17 = arith.constant 0 : i32
      %16 = arith.addi %c0_i32_17, %15 : i32
      %c0_i32_18 = arith.constant 0 : i32
      %c0_i32_19 = arith.constant 0 : i32
      %17 = tpu.memref_slice %arg2[%c0_i32_18, %c0_i32_19] : memref<33x32xf32, #tpu.memory_space<any>> -> memref<1x32xf32, #tpu.memory_space<any>>
      %18 = tpu.memref_squeeze %17 : memref<1x32xf32, #tpu.memory_space<any>> -> memref<32xf32, #tpu.memory_space<any>>
      %c0_i32_20 = arith.constant 0 : i32
      %19 = tpu.memref_slice %arg7[%16, %c0_i32_20] : memref<8x32xf32, #tpu.memory_space<vmem>> -> memref<1x32xf32, #tpu.memory_space<vmem>>
      %20 = tpu.memref_squeeze %19 : memref<1x32xf32, #tpu.memory_space<vmem>> -> memref<32xf32, #tpu.memory_space<vmem>>
      %21 = tpu.memref_slice %arg8[%16] : memref<8x!tpu.dma_semaphore, #tpu.memory_space<semaphore_mem>> -> memref<1x!tpu.dma_semaphore, #tpu.memory_space<semaphore_mem>>
      %22 = tpu.memref_squeeze %21 : memref<1x!tpu.dma_semaphore, #tpu.memory_space<semaphore_mem>> -> memref<!tpu.dma_semaphore, #tpu.memory_space<semaphore_mem>>
      tpu.wait_dma2 semaphore(%22 : memref<!tpu.dma_semaphore, #tpu.memory_space<semaphore_mem>>) src(%18 : memref<32xf32, #tpu.memory_space<any>>) dst(%20 : memref<32xf32, #tpu.memory_space<vmem>>)
    }
    %c8_i32_5 = arith.constant 8 : i32
    %c0 = arith.constant 0 : index
    %c0_6 = arith.constant 0 : index
    %3 = vector.load %arg7[%c0, %c0_6] : memref<8x32xf32, #tpu.memory_space<vmem>>, vector<8x32xf32>
    %c0_7 = arith.constant 0 : index
    %c0_8 = arith.constant 0 : index
    %4 = vector.load %arg3[%c0_7, %c0_8] : memref<1x32xf32, #tpu.memory_space<vmem>>, vector<1x32xf32>
    %5 = vector.broadcast %4 : vector<1x32xf32> to vector<8x32xf32>
    %6 = arith.addf %3, %5 : vector<8x32xf32>
    %cst = arith.constant 0.000000e+00 : f32
    %7 = vector.broadcast %cst : f32 to vector<8x32xf32>
    %8 = arith.maximumf %6, %7 : vector<8x32xf32>
    %c0_9 = arith.constant 0 : index
    %c0_10 = arith.constant 0 : index
    %9 = vector.load %arg4[%c0_9, %c0_10] : memref<32x128xf32, #tpu.memory_space<vmem>>, vector<32x128xf32>
    %cst_11 = arith.constant dense<0.000000e+00> : vector<8x128xf32>
    %10 = tpu.matmul %8, %9, %cst_11 {dimension_numbers = #tpu.dot_dimension_numbers<[1], [0], [0], [1], [0, 0, 1, 1], [], []>} : vector<8x32xf32>, vector<32x128xf32>, vector<8x128xf32> -> vector<8x128xf32>
    %c0_12 = arith.constant 0 : index
    %c0_13 = arith.constant 0 : index
    %11 = vector.load %arg5[%c0_12, %c0_13] : memref<1x128xf32, #tpu.memory_space<vmem>>, vector<1x128xf32>
    %12 = vector.broadcast %11 : vector<1x128xf32> to vector<8x128xf32>
    %13 = arith.addf %10, %12 : vector<8x128xf32>
    %c0_14 = arith.constant 0 : index
    %c0_15 = arith.constant 0 : index
    %14 = vector.load %arg6[%c0_14, %c0_15] : memref<8x128xf32, #tpu.memory_space<vmem>>, vector<8x128xf32>
    tpu.vector_store %arg6[%c0_14, %c0_15], %13 {strides = array<i32>} : memref<8x128xf32, #tpu.memory_space<vmem>>, vector<8x128xf32>,
    return
  }
  func.func @transform_1(%arg0: i32, %arg1: memref<8xi32, #tpu.memory_space<smem>>) -> (i32, i32) {
    %c0_i32 = arith.constant 0 : i32
    %c0_i32_0 = arith.constant 0 : i32
    %c0_i32_1 = arith.constant 0 : i32
    return %c0_i32, %c0_i32_0 : i32, i32
  }
  func.func @transform_2(%arg0: i32, %arg1: memref<8xi32, #tpu.memory_space<smem>>) -> (i32, i32) {
    %c0_i32 = arith.constant 0 : i32
    %c0_i32_0 = arith.constant 0 : i32
    %c0_i32_1 = arith.constant 0 : i32
    return %c0_i32, %c0_i32_0 : i32, i32
  }
  func.func @transform_3(%arg0: i32, %arg1: memref<8xi32, #tpu.memory_space<smem>>) -> (i32, i32) {
    %c0_i32 = arith.constant 0 : i32
    %c0_i32_0 = arith.constant 0 : i32
    %c0_i32_1 = arith.constant 0 : i32
    return %c0_i32, %c0_i32_0 : i32, i32
  }
  func.func @transform_4(%arg0: i32, %arg1: memref<8xi32, #tpu.memory_space<smem>>) -> (i32, i32) {
    %c0_i32 = arith.constant 0 : i32
    %c0_i32_0 = arith.constant 0 : i32
    return %arg0, %c0_i32 : i32, i32
  }
}

</mosaic_0001>

<bundles_post_ra>
// kernel: tpu_custom_call.1
= control target key start
LH: loop header
LB: loop body
LE: loop exit
PB: predicated region body
PF: predicated region fallthrough
CT: control target
= control target key end

     0   :  { %s441_s0 = inlined_call_operand.vmem [shape: s32[8], index: 0, kind: input, shape index: {}]   ;;  %s442_s1 = inlined_call_operand.vmem [shape: f32[33,32], index: 1, kind: input, shape index: {}]   ;;  %s443_s2 = inlined_call_operand.vmem [shape: f32[1,32], index: 2, kind: input, shape index: {}]   ;;  %s444_s3 = inlined_call_operand.vmem [shape: f32[32,128], index: 3, kind: input, shape index: {}]   ;;  %s445_s4 = inlined_call_operand.vmem [shape: f32[1,128], index: 4, kind: input, shape index: {}]   ;;  %s446_s5 = inlined_call_operand.hbm [shape: f32[8,128], index: 5, kind: output, shape index: {}]  }
   0x1   :  { %s10_s20 = sshll.u32 %s441_s0, 4  ;;  %s11_s20 = int_to_ptr.vmem [resolvable:$true] %s10_s20 }
   0x2   :  { %s326_s21 = scalar_lea.vmem %s11_s20, 16  ;;  %p331_p1 = scmp.lt.s32.totalorder %s11_s20, %s11_s20 }
   0x3   :  { %p327_p0 = scmp.ne.s32.totalorder %s11_s20, %s326_s21  ;;  %p332_p2 = scmp.lt.s32.totalorder %s326_s21, %s326_s21 }
   0x5   :  { %p333_p3 = por %p332_p2, %p331_p1 }
   0x7   :  { %p334_p4 = pnand %p333_p3, %p327_p0 }
   0x9   :  { %337 = shalt.err (!%p334_p4)  }
   0xa   :  { %s380_s22 = smov [#allocation5]  }
   0xb   :  { %13 = dma.vmem_to_smem %s11_s20, 16, %s380_s22, [#allocation4] }
   0xc   :  { %366 = dma.done.wait [#allocation4], 16 }
   0xd   :  { %367 = vsyncadd [#allocation4], 4294967280 }
   0xe   :  { %15 = sfence }
   0xf   :  { %16 = vsyncpa [#allocation7], 0  ;;  %s372_s23 = smov 0  }
  0x10 LB: > { %s31_s24 = sld [smem:[#allocation5 + %s374_s23]]  ;;  %s33_s27 = scalar_lea.vmem [#allocation2], %s374_s23  ;;  %s374_s23 = sphi %s372_s23, %s29_s23  }
  0x11   : > { %s34_s28 = scalar_lea.sflag [#allocation3], %s374_s23 }
  0x16   : > { %s32_s26 = scalar_lea.vmem %s442_s1, %s31_s24 }
  0x17   : > { %v53_v0 = vld [vmem:[%s32_s26] sm:$0x1] }
  0x18   : > { %54 = vst [vmem:[%s33_s27] sm:$0x1] %v53_v0 }
  0x19   : > { %80 = vsyncadd %s34_s28, 16  ;;  %s29_s23 = sadd.s32 1, %s374_s23  }
  0x1a   : > { %p26_p5 = scmp.ge.s32.totalorder %s29_s23, 8  }
  0x1b   :  { %s376_s29 = smov (%p26_p5), 0  }
  0x1c   :  { %28 = sbr.rel (!%p26_p5) target bundleno = 16 (0x10), region = 97 }
  0x21 LB: > { %s87_s30 = scalar_lea.sflag [#allocation3], %s378_s29  ;;  %s378_s29 = sphi %s376_s29, %s86_s29  }
  0x22   : > { %368 = dma.done.wait %s87_s30, 16 }
  0x23   : > { %369 = vsyncadd %s87_s30, 4294967280  ;;  %s86_s29 = sadd.s32 1, %s378_s29  }
  0x24   : > { %p83_p6 = scmp.ge.s32.totalorder %s86_s29, 8  }
  0x25   :  { %v103_v1 = vld [vmem:[%s444_s3 + $0x18] sm:$0xff] (%p83_p6)  ;;  %v381_v2 = vmov (%p83_p6), 0.0   ;;  %v102_v3 = vld [vmem:[%s444_s3 + $0x10] sm:$0xff] (%p83_p6)  ;;  %vm382_vm0 = vmmov (%p83_p6), 0   ;;  %v90_v4 = vld [vmem:[#allocation2] sm:$0xff] (%p83_p6)  ;;  %vm111_vm1 = vcmask (%p83_p6), 261120  }
  0x26   :  { %85 = sbr.rel (!%p83_p6) target bundleno = 33 (0x21), region = 108  ;;  %295 = vmatprep.subr.mxu0 (%p83_p6), %v381_v2  ;;  %303 = vmatprep.mubr.msk.f32.mxu0 (%p83_p6), %vm382_vm0, %v381_v2  ;;  %v279_v5 = vld [vmem:[%s443_s2] ss:$0 sm:$0xff] (%p83_p6)  ;;  %v101_v7 = vld [vmem:[%s444_s3 + $0x8] sm:$0xff] (%p83_p6)  ;;  %s383_s16 = smov (%p83_p6), [#allocation6]  }
  0x27   :  { %296 = vmatpush3.msra.mxu0 (%p83_p6), %v103_v1  ;;  %v98_v6 = vadd.f32 (%p83_p6), %v279_v5, %v90_v4  ;;  %v100_v8 = vld [vmem:[%s444_s3] sm:$0xff] (%p83_p6)  ;;  %s192_s17 = sshll.u32 (%p83_p6), %s383_s16, 4  ;;  %s193_s17 = int_to_ptr.vmem [resolvable:$true] %s192_s17 }
  0x28   :  { %297 = vmatprep.subr.mxu0 (%p83_p6), %v381_v2  ;;  %v280_v10 = vld [vmem:[%s445_s4] ss:$0 sm:$0xff] (%p83_p6)  ;;  %s338_s18 = scalar_lea.vmem (%p83_p6), %s193_s17, 128  ;;  %p343_p8 = scmp.lt.s32.totalorder (%p83_p6), %s193_s17, %s193_s17 }
  0x29   :  { %298 = vmatpush3.msra.mxu0 (%p83_p6), %v102_v3  ;;  %v99_v9 = vmax.f32 (%p83_p6), %v98_v6, 0.0  ;;  %p339_p7 = scmp.ne.s32.totalorder (%p83_p6), %s193_s17, %s338_s18  ;;  %p344_p9 = scmp.lt.s32.totalorder (%p83_p6), %s338_s18, %s338_s18 }
  0x2a   :  { %299 = vmatprep.subr.mxu0 (%p83_p6), %v381_v2 }
  0x2b   :  { %300 = vmatpush3.msra.mxu0 %v101_v7  ;;  %p345_p10 = por %p344_p9, %p343_p8 }
  0x2c   :  { %301 = vmatprep.subr.mxu0 %v381_v2 }
  0x2d   :  { %302 = vmatpush3.msra.mxu0 %v100_v8  ;;  %p346_p11 = pnand %p345_p10, %p339_p7 }
  0x2e   :  { %304 = vmatmul.mubr.msk.f32.vlgmr.msra.gmra.mxu0 %vm111_vm1, %v99_v9 }
  0xee   :  { %v181_v11 = vpop.f32.mrf.mxu0 }
  0xef   :  { %v182_v12 = vadd.f32 %v280_v10, %v181_v11 }
  0xf0   :  { %v305_v13 = vpop.f32.mrf.mxu0 }
  0xf1   :  { %185 = vst [vmem:[#allocation6] sm:$0xff] %v182_v12 }
  0xf2   :  { %349 = shalt.err (!%p346_p11)
}
  0xf3   :  { %195 = dma.vmem_to_hbm [thread:$0]  %s193_s17, 128, %s446_s5, [#allocation7]  }
  0xf4   :  { %370 = dma.done.wait [#allocation7], 128  }
  0xf5   :  { %371 = vsyncadd [#allocation7], 4294967168 }
  0xf6   :  { %199 = vsyncpa [#allocation7], 1 }
  0xf7   :  { %200 = vsyncmov [#allocation3] }
  0xfa   :  { %s201_s4 = vpop.sfrf %200 }
  0xfb   :  { %p282_p12 = scmp.ne.s32.totalorder %s201_s4, 0 }
  0xfd   :  { %205 = shalt.err (%p282_p12)  }
  0xfe   :  { %207 = vsyncmov [#allocation3 + $0x1] }
 0x101   :  { %s208_s20 = vpop.sfrf %207 }
 0x102   :  { %p283_p13 = scmp.ne.s32.totalorder %s208_s20, 0 }
 0x104   :  { %212 = shalt.err (%p283_p13)  }
 0x105   :  { %214 = vsyncmov [#allocation3 + $0x2] }
 0x108   :  { %s215_s21 = vpop.sfrf %214 }
 0x109   :  { %p284_p0 = scmp.ne.s32.totalorder %s215_s21, 0 }
 0x10b   :  { %219 = shalt.err (%p284_p0)  }
 0x10c   :  { %221 = vsyncmov [#allocation3 + $0x3] }
 0x10f   :  { %s222_s22 = vpop.sfrf %221 }
 0x110   :  { %p285_p1 = scmp.ne.s32.totalorder %s222_s22, 0 }
 0x112   :  { %226 = shalt.err (%p285_p1)  }
 0x113   :  { %228 = vsyncmov [#allocation3 + $0x4] }
 0x116   :  { %s229_s5 = vpop.sfrf %228 }
 0x117   :  { %p286_p2 = scmp.ne.s32.totalorder %s229_s5, 0 }
 0x119   :  { %233 = shalt.err (%p286_p2)  }
 0x11a   :  { %235 = vsyncmov [#allocation3 + $0x5] }
 0x11d   :  { %s236_s23 = vpop.sfrf %235 }
 0x11e   :  { %p287_p3 = scmp.ne.s32.totalorder %s236_s23, 0 }
 0x120   :  { %240 = shalt.err (%p287_p3)  }
 0x121   :  { %242 = vsyncmov [#allocation3 + $0x6] }
 0x124   :  { %s243_s24 = vpop.sfrf %242 }
 0x125   :  { %p288_p4 = scmp.ne.s32.totalorder %s243_s24, 0 }
 0x127   :  { %247 = shalt.err (%p288_p4)  }
 0x128   :  { %249 = vsyncmov [#allocation3 + $0x7] }
 0x12b   :  { %s250_s0 = vpop.sfrf %249 }
 0x12c   :  { %p289_p5 = scmp.ne.s32.totalorder %s250_s0, 0 }
 0x12e   :  { %254 = shalt.err (%p289_p5)  }

</bundles_post_ra>
